<compile_context>
chip_gen: v6e
topology: v6e:2x2x1
jax: 0.10.0
libtpu: 0.0.40
codegen_flags: <defaults>
</compile_context>

<pallas_src>
from functools import partial

import jax
import jax.numpy as jnp
from jax.experimental import pallas as pl
from jax.experimental.pallas import tpu as pltpu


def _bilinear_kernel(us_ref, b_ref, vs_ref, o_ref):
    # (TILE_N, D1) @ (D1, D1) on the MXU with f32 accumulation, then the
    # elementwise multiply + feature reduction in f32 on the VPU/XLU.
    ub = jnp.dot(us_ref[...], b_ref[...], preferred_element_type=jnp.float32)
    vs = vs_ref[...].astype(jnp.float32)
    o_ref[...] = jnp.sum(ub * vs, axis=1, keepdims=True)


def _round_up(x, m):
    return ((x + m - 1) // m) * m


def bilinear_form(Us, B, Vs, *, tile_n=1024):
    """act[n] = Us[n] @ B @ Vs[n], tiled over rows with a 1-D parallel grid."""
    N, D1 = Us.shape
    itemsize = int(jnp.dtype(Us.dtype).itemsize)
    # Sublane granularity: 8 for 32-bit, 16 for 16-bit packed dtypes.
    row_align = 8 if itemsize >= 4 else 16

    tile_n = max(row_align, min(int(tile_n), _round_up(N, row_align)))
    tile_n = _round_up(tile_n, row_align)
    n_pad = _round_up(N, tile_n)
    if n_pad != N:
        pad = n_pad - N
        Us = jnp.pad(Us, ((0, pad), (0, 0)))
        Vs = jnp.pad(Vs, ((0, pad), (0, 0)))

    grid = (pl.cdiv(n_pad, tile_n),)

    flops = 2 * n_pad * D1 * D1 + 2 * n_pad * D1
    bytes_accessed = (2 * n_pad * D1 + D1 * D1) * itemsize + n_pad * 4

    out = pl.pallas_call(
        _bilinear_kernel,
        out_shape=jax.ShapeDtypeStruct((n_pad, 1), jnp.float32),
        grid_spec=pltpu.PrefetchScalarGridSpec(
            num_scalar_prefetch=0,
            grid=grid,
            in_specs=[
                pl.BlockSpec((tile_n, D1), lambda i: (i, 0)),   # Us tile
                pl.BlockSpec((D1, D1), lambda i: (0, 0)),        # B (resident)
                pl.BlockSpec((tile_n, D1), lambda i: (i, 0)),   # Vs tile
            ],
            out_specs=pl.BlockSpec((tile_n, 1), lambda i: (i, 0)),
        ),
        compiler_params=pltpu.CompilerParams(
            dimension_semantics=("parallel",)),
        cost_estimate=pl.CostEstimate(
            flops=int(flops),
            transcendentals=0,
            bytes_accessed=int(bytes_accessed)),
    )(Us, B, Vs)
    return out[:N, 0]


@partial(jax.jit, static_argnames=("compute_dtype", "tile_n"))
def _gather_bilinear(U1, V1, B_r, us_ind, vs_ind, *, compute_dtype, tile_n):
    # Gather (fancy indexing) is plain-JAX glue, fused under jit with the pad.
    Us = jnp.take(U1, us_ind, axis=0).astype(compute_dtype)
    Vs = jnp.take(V1, vs_ind, axis=0).astype(compute_dtype)
    return bilinear_form(Us, B_r.astype(compute_dtype), Vs, tile_n=tile_n)


class ModelPallas:
    """JAX/Pallas port of ModelTorch (forward pass only)."""

    def __init__(self, vocab, relations, embedding_dimension=50, seed=0,
                 compute_dtype=jnp.float32, tile_n=1024):
        self.lin = True
        self.vocab = vocab
        self.vocab_size = len(vocab)
        self.emb_size = embedding_dimension
        self.b_size = embedding_dimension + (1 if self.lin else 0)
        self.relation_names = list(relations.keys())
        self.compute_dtype = compute_dtype
        self.tile_n = int(tile_n)

        key = jax.random.PRNGKey(seed)
        kU, kV, kB = jax.random.split(key, 3)
        # Deterministic "randn * scale" init mirroring the PyTorch __init__.
        self.U = 0.01 * jax.random.normal(
            kU, (self.vocab_size, embedding_dimension), dtype=jnp.float32)
        self.V = 0.01 * jax.random.normal(
            kV, (self.vocab_size, embedding_dimension), dtype=jnp.float32)
        n_rel = max(len(relations), 1)
        self.B = 0.001 * jax.random.normal(
            kB, (n_rel, self.b_size, self.b_size), dtype=jnp.float32)

        # Bias-augmented tables, built once (not per forward call).
        if self.lin:
            ones = jnp.ones((self.vocab_size, 1), dtype=jnp.float32)
            self.U1 = jnp.concatenate([self.U, ones], axis=1)
            self.V1 = jnp.concatenate([self.V, ones], axis=1)
        else:
            self.U1 = self.U
            self.V1 = self.V

    def forward(self, us_ind, vs_ind, r_ind):
        us_ind = jnp.asarray(us_ind, dtype=jnp.int32)
        vs_ind = jnp.asarray(vs_ind, dtype=jnp.int32)
        B_r = self.B[r_ind]                      # works for int or traced r_ind
        return _gather_bilinear(
            self.U1, self.V1, B_r, us_ind, vs_ind,
            compute_dtype=self.compute_dtype, tile_n=self.tile_n)


if __name__ == "__main__":
    # Small synthetic vocabulary / relations consistent with the module.
    vocab_size = 32
    emb_dim = 16
    vocab = [("w%d" % i, i) for i in range(vocab_size)]
    relations = {
        "co":  [(0, 1, 1.0), (2, 3, 1.0)],
        "syn": [(4, 5, 1.0), (6, 7, 1.0)],
    }

    model = ModelPallas(vocab, relations, embedding_dimension=emb_dim, seed=0)

    key = jax.random.PRNGKey(0)
    k1, k2 = jax.random.split(key)
    N = 64
    us_ind = jax.random.randint(k1, (N,), 0, vocab_size)
    vs_ind = jax.random.randint(k2, (N,), 0, vocab_size)
    r_ind = 0

    act = model.forward(us_ind, vs_ind, r_ind)
    act = jax.block_until_ready(act)

    # Pure-JAX reference check of the bilinear form (f32 path).
    ones = jnp.ones((vocab_size, 1), dtype=jnp.float32)
    U1 = jnp.concatenate([model.U, ones], axis=1)
    V1 = jnp.concatenate([model.V, ones], axis=1)
    ref = jnp.sum((U1[us_ind] @ model.B[r_ind]) * V1[vs_ind], axis=1)
    assert act.shape == (N,)
    assert jnp.allclose(act, ref, atol=1e-5, rtol=1e-5)

    print("KERNEL_OK")
</pallas_src>

<mosaic_0001>
module attributes {stable_mosaic.version = 11 : i64} {
  func.func @_bilinear_kernel(%arg0: i32, %arg1: memref<64x17xf32, #tpu.memory_space<vmem>>, %arg2: memref<17x17xf32, #tpu.memory_space<vmem>>, %arg3: memref<64x17xf32, #tpu.memory_space<vmem>>, %arg4: memref<64x1xf32, #tpu.memory_space<vmem>>) attributes {dimension_semantics = [#tpu.dimension_semantics<parallel>], iteration_bounds = array<i64: 1>, scalar_prefetch = 0 : i64, scratch_operands = 0 : i64, tpu.core_type = #tpu.core_type<tc>, window_params = [{transform_indices = @transform_0, window_bounds = array<i64: 64, 17>}, {pipeline_mode = #tpu.pipeline_mode<synchronous>, transform_indices = @transform_1, window_bounds = array<i64: 17, 17>}, {transform_indices = @transform_2, window_bounds = array<i64: 64, 17>}, {transform_indices = @transform_3, window_bounds = array<i64: 64, 1>}]} {
    %c0 = arith.constant 0 : index
    %c0_0 = arith.constant 0 : index
    %0 = vector.load %arg1[%c0, %c0_0] : memref<64x17xf32, #tpu.memory_space<vmem>>, vector<64x17xf32>
    %c0_1 = arith.constant 0 : index
    %c0_2 = arith.constant 0 : index
    %1 = vector.load %arg2[%c0_1, %c0_2] : memref<17x17xf32, #tpu.memory_space<vmem>>, vector<17x17xf32>
    %cst = arith.constant dense<0.000000e+00> : vector<64x17xf32>
    %2 = tpu.matmul %0, %1, %cst {dimension_numbers = #tpu.dot_dimension_numbers<[1], [0], [0], [1], [0, 0, 1, 1], [], []>} : vector<64x17xf32>, vector<17x17xf32>, vector<64x17xf32> -> vector<64x17xf32>
    %c0_3 = arith.constant 0 : index
    %c0_4 = arith.constant 0 : index
    %3 = vector.load %arg3[%c0_3, %c0_4] : memref<64x17xf32, #tpu.memory_space<vmem>>, vector<64x17xf32>
    %4 = arith.mulf %2, %3 : vector<64x17xf32>
    %cst_5 = arith.constant dense<0.000000e+00> : vector<64xf32>
    %5 = vector.multi_reduction <add>, %4, %cst_5 [1] : vector<64x17xf32> to vector<64xf32>
    %6 = vector.shape_cast %5 : vector<64xf32> to vector<64x1xf32>
    %c0_6 = arith.constant 0 : index
    %c0_7 = arith.constant 0 : index
    %7 = vector.load %arg4[%c0_6, %c0_7] : memref<64x1xf32, #tpu.memory_space<vmem>>, vector<64x1xf32>
    tpu.vector_store %arg4[%c0_6, %c0_7], %6 {strides = array<i32>} : memref<64x1xf32, #tpu.memory_space<vmem>>, vector<64x1xf32>,
    return
  }
  func.func @transform_0(%arg0: i32) -> (i32, i32) {
    %c0_i32 = arith.constant 0 : i32
    %c0_i32_0 = arith.constant 0 : i32
    return %arg0, %c0_i32 : i32, i32
  }
  func.func @transform_1(%arg0: i32) -> (i32, i32) {
    %c0_i32 = arith.constant 0 : i32
    %c0_i32_0 = arith.constant 0 : i32
    %c0_i32_1 = arith.constant 0 : i32
    return %c0_i32, %c0_i32_0 : i32, i32
  }
  func.func @transform_2(%arg0: i32) -> (i32, i32) {
    %c0_i32 = arith.constant 0 : i32
    %c0_i32_0 = arith.constant 0 : i32
    return %arg0, %c0_i32 : i32, i32
  }
  func.func @transform_3(%arg0: i32) -> (i32, i32) {
    %c0_i32 = arith.constant 0 : i32
    %c0_i32_0 = arith.constant 0 : i32
    return %arg0, %c0_i32 : i32, i32
  }
}

</mosaic_0001>

<bundles_post_ra>
// kernel: _gather_bilinear.1
= control target key start
LH: loop header
LB: loop body
LE: loop exit
PB: predicated region body
PF: predicated region fallthrough
CT: control target
= control target key end

     0   :  { %vm50_vm0 = vcmask 1040384   ;;  %vm25_vm1 = vcmask 138240   ;;  %vm199_vm2 = vcmask 7168   ;;  %s381_s1 = inlined_call_operand.vmem [shape: f32[17,17], index: 1, kind: input, shape index: {}]   ;;  %s382_s0 = inlined_call_operand.vmem [shape: f32[64,17], index: 0, kind: input, shape index: {}]   ;;  %s383_s2 = inlined_call_operand.vmem [shape: f32[64,17], index: 2, kind: input, shape index: {}]   ;;  %s384_s3 = inlined_call_operand.vmem [shape: f32[64,1], index: 3, kind: output, shape index: {}]  }
   0x1   :  { %v24_v0 = vld [vmem:[%s381_s1 + $0x10] sm:$0x1]  ;;  %v23_v1 = vld [vmem:[%s381_s1 + $0x8] sm:$0xff]  ;;  %v22_v2 = vld [vmem:[%s381_s1] sm:$0xff] }
   0x2   :  { %232 = vmatprep.subr.msk.mxu0 %vm50_vm0, %v24_v0  ;;  %250 = vmatprep.subr.msk.mxu1 %vm50_vm0, %v24_v0  ;;  %v14_v3 = vld [vmem:[%s382_s0] sm:$0xff]  ;;  %v15_v5 = vld [vmem:[%s382_s0 + $0x8] sm:$0xff]  ;;  %v16_v7 = vld [vmem:[%s382_s0 + $0x10] sm:$0xff] }
   0x3   :  { %233 = vmatpush3.msk.msra.mxu0 %vm50_vm0, %v24_v0  ;;  %253 = vmatpush3.msk.msra.mxu1 %vm50_vm0, %v24_v0  ;;  %v18_v4 = vld [vmem:[%s382_s0 + $0x20] sm:$0xff]  ;;  %v19_v6 = vld [vmem:[%s382_s0 + $0x28] sm:$0xff]  ;;  %v20_v8 = vld [vmem:[%s382_s0 + $0x30] sm:$0xff] }
   0x4   :  { %234 = vmatprep.subr.mxu0 %v23_v1  ;;  %251 = vmatprep.subr.mxu1 %v23_v1  ;;  %v17_v9 = vld [vmem:[%s382_s0 + $0x18] sm:$0xff]  ;;  %v160_v11 = vld [vmem:[%s383_s2 + $0x8] sm:$0xff]  ;;  %v159_v15 = vld [vmem:[%s383_s2] sm:$0xff] }
   0x5   :  { %235 = vmatpush3.msra.mxu0 %v23_v1  ;;  %254 = vmatpush3.msra.mxu1 %v23_v1  ;;  %v21_v10 = vld [vmem:[%s382_s0 + $0x38] sm:$0xff]  ;;  %v164_v12 = vld [vmem:[%s383_s2 + $0x28] sm:$0xff]  ;;  %v163_v24 = vld [vmem:[%s383_s2 + $0x20] sm:$0xff] }
   0x6   :  { %236 = vmatprep.subr.mxu0 %v22_v2  ;;  %252 = vmatprep.subr.mxu1 %v22_v2  ;;  %v162_v20 = vld [vmem:[%s383_s2 + $0x18] sm:$0xff]  ;;  %v161_v26 = vld [vmem:[%s383_s2 + $0x10] sm:$0xff] }
   0x7   :  { %237 = vmatpush3.msra.mxu0 %v22_v2  ;;  %255 = vmatpush3.msra.mxu1 %v22_v2  ;;  %v166_v34 = vld [vmem:[%s383_s2 + $0x38] sm:$0xff]  ;;  %v165_v36 = vld [vmem:[%s383_s2 + $0x30] sm:$0xff] }
   0x8   :  { %238 = vmatprep.mubr.msk.f32.mxu0 %vm25_vm1, %v14_v3  ;;  %244 = vmatprep.mubr.msk.f32.mxu1 %vm25_vm1, %v18_v4 }
   0x9   :  { %239 = vmatmul.mubr.msk.f32.vlgmr.msra.gmra.mxu0 %vm25_vm1, %v15_v5  ;;  %245 = vmatmul.mubr.msk.f32.vlgmr.msra.gmra.mxu1 %vm25_vm1, %v19_v6 }
   0xa   :  { %241 = vmatprep.mubr.msk.f32.mxu0 %vm25_vm1, %v16_v7  ;;  %247 = vmatprep.mubr.msk.f32.mxu1 %vm25_vm1, %v20_v8 }
   0xd   :  { %242 = vmatmul.mubr.msk.f32.gmra.mxu0 %vm25_vm1, %v17_v9  ;;  %248 = vmatmul.mubr.msk.f32.gmra.mxu1 %vm25_vm1, %v21_v10 }
  0xc9   :  { %v240_v13 = vpop.f32.mrf.mxu0  ;;  %v246_v14 = vpop.f32.mrf.mxu1 }
  0xca   :  { %v168_v16 = vmul.f32 %v240_v13, %v160_v11  ;;  %v172_v17 = vmul.f32 %v246_v14, %v164_v12 }
  0xcb   :  { %v120_v18 = vpop.f32.mrf.mxu0  ;;  %v140_v19 = vpop.f32.mrf.mxu1 }
  0xcc   :  { %v167_v21 = vmul.f32 %v159_v15, %v120_v18  ;;  %v190_v22 = vsel %vm25_vm1, %v172_v17, 0.0  ;;  %v178_v23 = vsel %vm25_vm1, %v168_v16, 0.0  ;;  %v171_v30 = vmul.f32 %v163_v24, %v140_v19 }
  0xcd   :  { %191 = vadd.xlane.f32.xlu1 %v190_v22  ;;  %179 = vadd.xlane.f32.xlu0 %v178_v23  ;;  %v243_v25 = vpop.f32.mrf.mxu0  ;;  %v249_v27 = vpop.f32.mrf.mxu1 }
  0xce   :  { %v170_v28 = vmul.f32 %v243_v25, %v162_v20  ;;  %v175_v32 = vsel %vm25_vm1, %v167_v21, 0.0  ;;  %v174_v37 = vmul.f32 %v249_v27, %v166_v34  ;;  %v187_v39 = vsel %vm25_vm1, %v171_v30, 0.0 }
  0xcf   :  { %v130_v29 = vpop.f32.mrf.mxu0  ;;  %v150_v35 = vpop.f32.mrf.mxu1 }
  0xd0   :  { %v169_v31 = vmul.f32 %v161_v26, %v130_v29  ;;  %v184_v33 = vsel %vm25_vm1, %v170_v28, 0.0  ;;  %v173_v38 = vmul.f32 %v165_v36, %v150_v35  ;;  %v196_v42 = vsel %vm25_vm1, %v174_v37, 0.0 }
  0xd1   :  { %176 = vadd.xlane.f32.xlu0 %v175_v32  ;;  %185 = vadd.xlane.f32.xlu1 %v184_v33 }
  0xd2   :  { %v181_v40 = vsel %vm25_vm1, %v169_v31, 0.0  ;;  %v193_v41 = vsel %vm25_vm1, %v173_v38, 0.0 }
  0xd5   :  { %188 = vadd.xlane.f32.xlu0 %v187_v39  ;;  %182 = vadd.xlane.f32.xlu1 %v181_v40 }
  0xd9   :  { %194 = vadd.xlane.f32.xlu0 %v193_v41  ;;  %197 = vadd.xlane.f32.xlu1 %v196_v42 }
 0x156   :  { %v192_v43 = vpop.xlane.xlu1 %191  ;;  %v180_v44 = vpop.xlane.xlu0 %179 }
 0x157   :  { %205 = vst.msk [vmem:[%s384_s3 + $0x28] sm:$0xff] %vm199_vm2, %v192_v43  ;;  %201 = vst.msk [vmem:[%s384_s3 + $0x8] sm:$0xff] %vm199_vm2, %v180_v44 }
 0x15a   :  { %v177_v45 = vpop.xlane.xlu0 %176  ;;  %v186_v46 = vpop.xlane.xlu1 %185 }
 0x15b   :  { %200 = vst.msk [vmem:[%s384_s3] sm:$0xff] %vm199_vm2, %v177_v45  ;;  %203 = vst.msk [vmem:[%s384_s3 + $0x18] sm:$0xff] %vm199_vm2, %v186_v46 }
 0x15e   :  { %v189_v47 = vpop.xlane.xlu0 %188  ;;  %v183_v48 = vpop.xlane.xlu1 %182 }
 0x15f   :  { %204 = vst.msk [vmem:[%s384_s3 + $0x20] sm:$0xff] %vm199_vm2, %v189_v47  ;;  %202 = vst.msk [vmem:[%s384_s3 + $0x10] sm:$0xff] %vm199_vm2, %v183_v48 }
 0x162   :  { %v195_v49 = vpop.xlane.xlu0 %194  ;;  %v198_v50 = vpop.xlane.xlu1 %197 }
 0x163   :  { %206 = vst.msk [vmem:[%s384_s3 + $0x30] sm:$0xff] %vm199_vm2, %v195_v49  ;;  %207 = vst.msk [vmem:[%s384_s3 + $0x38] sm:$0xff] %vm199_vm2, %v198_v50 }

</bundles_post_ra>
